<compile_context>
chip_gen: v6e
topology: v6e:2x2x1
jax: 0.10.0
libtpu: 0.0.40
codegen_flags: <defaults>
</compile_context>

<pallas_src>
import jax
import jax.numpy as jnp
from jax import lax
from jax.experimental import pallas as pl
from jax.experimental.pallas import tpu as pltpu


def _round_up(a, b):
    return (a + b - 1) // b * b


# Combined resident-weight bytes above which the second pipeline buffer for
# the weight operands is worth dropping (below this it costs nothing).
_WEIGHT_SINGLE_BUFFER_MIN_BYTES = 1 << 20


def _hw_params():
    """Returns (tile_budget_bytes, vmem_limit_bytes, preferred_tm) for the
    local TPU generation (falls back to 128 MiB-class numbers)."""
    cap = 128 * 1024 * 1024
    try:
        cap = int(pltpu.get_tpu_info().vmem_capacity_bytes)
    except Exception:
        pass
    if cap <= 64 * 1024 * 1024:
        # v7x-class: 64 MiB VMEM per TensorCore -> stay well inside it.
        return 30 * 1024 * 1024, 40 * 1024 * 1024, 256
    # v5e / v6e: 128 MiB VMEM -> larger row tiles (~85% HBM roofline at 512).
    return 64 * 1024 * 1024, 80 * 1024 * 1024, 512


def _weights_single_buffered(tn, tk, w_isz, k_tiled):
    # Weight block index is constant along the inner (M / K) axes only when K
    # is untiled; then a single buffer suffices and halves weight VMEM.
    return (not k_tiled) and (2 * tn * tk * w_isz >= _WEIGHT_SINGLE_BUFFER_MIN_BYTES)


def _footprint(tm, tn, tk, x_isz, w_isz, out_isz, k_tiled):
    """Approximate VMEM bytes for one pipeline configuration (with buffering)."""
    wbuf = 1 if _weights_single_buffered(tn, tk, w_isz, k_tiled) else 2
    fp = 2 * tm * tk * x_isz                     # x tile, double buffered
    fp += wbuf * 2 * tn * tk * w_isz             # W_v + W_t tiles
    fp += 2 * tm * max(tn, 128) * out_isz        # out tile, double buffered
    fp += 2 * tm * 128 * 4                       # (tm,1) int32 mask, lane padded
    if k_tiled:
        fp += tm * tn * 4                        # f32 accumulator scratch
    return fp


def _select_tiling(M, K, N, x_isz, w_isz, out_isz, budget, tm_pref):
    """Pick (tm, tn, tk). Preference: untiled K with the widest N tile
    (weights fetched the fewest times), largest row tile that fits; K tiling
    only when even a 128-wide N tile with full K blows the budget."""
    n_full = _round_up(N, 128)
    m_ceil = _round_up(M, 8)

    if m_ceil <= tm_pref:
        tms = [m_ceil]
    else:
        tms = sorted({tm_pref, 256, 128}, reverse=True)
    tns = [n_full] + [t for t in (1024, 512, 256, 128) if t < n_full]
    tks = [t for t in (2048, 1024, 512, 256, 128) if t < K]

    for k_tiled, tk_list in ((False, [K]), (True, tks)):
        for tk in tk_list:
            for tn in tns:
                for tm in tms:
                    if _footprint(tm, tn, tk, x_isz, w_isz, out_isz, k_tiled) <= budget:
                        return tm, tn, tk
    # Fallback: smallest tiles; compiler will report if this still misses.
    return tms[-1], 128, (128 if K > 128 else K)


def _masked_matmul(x, wv, wt, mask, compute_dtype):
    """x:(TM,TK), wv/wt:(TN,TK) [out,in] layout, mask:(TM,1) int32.
    Returns f32 (TM,TN) partial result for this K tile."""
    if compute_dtype is not None and x.dtype != compute_dtype:
        x = x.astype(compute_dtype)          # per-tile cast (bf16 MXU path)
    sel = mask != 0                          # (TM,1) bool row mask
    x_v = jnp.where(sel, x, 0)               # rows routed to W_v
    x_t = jnp.where(sel, 0, x)               # rows routed to W_t
    dn = (((1,), (1,)), ((), ()))            # contract K on both operands (x @ W.T)
    out = lax.dot_general(x_t, wt, dn, preferred_element_type=jnp.float32)
    out = out + lax.dot_general(x_v, wv, dn, preferred_element_type=jnp.float32)
    return out


def _make_kernel(compute_dtype, k_tiled):
    if not k_tiled:
        def kernel(x_ref, wv_ref, wt_ref, mask_ref, o_ref):
            out = _masked_matmul(x_ref[...], wv_ref[...], wt_ref[...],
                                 mask_ref[...], compute_dtype)
            o_ref[...] = out.astype(o_ref.dtype)
        return kernel

    def kernel(x_ref, wv_ref, wt_ref, mask_ref, o_ref, acc_ref):
        k = pl.program_id(2)

        @pl.when(k == 0)
        def _():
            acc_ref[...] = jnp.zeros_like(acc_ref)

        acc_ref[...] += _masked_matmul(x_ref[...], wv_ref[...], wt_ref[...],
                                       mask_ref[...], compute_dtype)

        @pl.when(k == pl.num_programs(2) - 1)
        def _():
            o_ref[...] = acc_ref[...].astype(o_ref.dtype)

    return kernel


def masked_linear(x, w_v, w_t, visual_mask, *, compute_dtype=None,
                  tm=None, tn=None, tk=None, vmem_limit_bytes=None):
    """x: [B, S, K]; w_v, w_t: [N, K] (PyTorch nn.Linear layout);
    visual_mask: [B, S] bool.  Returns [B, S, N] in x.dtype."""
    B, S, K = x.shape
    N = w_v.shape[0]
    M = B * S
    out_dtype = x.dtype

    x_isz = jnp.dtype(x.dtype).itemsize
    w_dtype = compute_dtype if compute_dtype is not None else w_v.dtype
    w_isz = jnp.dtype(w_dtype).itemsize
    out_isz = jnp.dtype(out_dtype).itemsize

    budget, auto_vmem_limit, tm_pref = _hw_params()
    if vmem_limit_bytes is None:
        vmem_limit_bytes = auto_vmem_limit

    a_tm, a_tn, a_tk = _select_tiling(M, K, N, x_isz, w_isz, out_isz, budget, tm_pref)
    tm = a_tm if tm is None else tm
    tn = a_tn if tn is None else tn
    tk = a_tk if tk is None else tk

    k_tiled = tk < K
    k_pad = _round_up(K, tk) if k_tiled else K
    m_pad = _round_up(M, tm)
    n_pad = _round_up(N, tn)            # multiple of tn, itself a 128-multiple

    # --- Weights: pad to lane-dense shape, cast once (weight-sized work; for
    # repeated calls pre-pad/cast outside and these become no-ops). ---
    wv, wt = w_v, w_t
    if compute_dtype is not None and wv.dtype != compute_dtype:
        wv = wv.astype(compute_dtype)
        wt = wt.astype(compute_dtype)
    if wv.shape != (n_pad, k_pad):
        wv = jnp.pad(wv, ((0, n_pad - N), (0, k_pad - K)))
        wt = jnp.pad(wt, ((0, n_pad - N), (0, k_pad - K)))

    # --- Activations / mask: pad only when a ragged tile forces it. x is NOT
    # cast here; the kernel casts the (tm, tk) tile (no extra HBM pass). ---
    x_flat = x.reshape(M, K)
    mask_flat = visual_mask.reshape(M, 1).astype(jnp.int32)
    if m_pad != M or k_pad != K:
        x_flat = jnp.pad(x_flat, ((0, m_pad - M), (0, k_pad - K)))
    if m_pad != M:
        mask_flat = jnp.pad(mask_flat, ((0, m_pad - M), (0, 0)))

    grid_n = n_pad // tn
    grid_m = m_pad // tm
    grid_k = k_pad // tk

    single_w = _weights_single_buffered(tn, tk, w_isz, k_tiled)

    def w_block_spec(index_map):
        if single_w:
            return pl.BlockSpec((tn, tk), index_map, pipeline_mode=pl.Buffered(1))
        return pl.BlockSpec((tn, tk), index_map)

    if k_tiled:
        grid = (grid_n, grid_m, grid_k)
        x_spec = pl.BlockSpec((tm, tk), lambda j, i, k: (i, k))
        wv_spec = w_block_spec(lambda j, i, k: (j, k))
        wt_spec = w_block_spec(lambda j, i, k: (j, k))
        m_spec = pl.BlockSpec((tm, 1), lambda j, i, k: (i, 0))
        o_spec = pl.BlockSpec((tm, tn), lambda j, i, k: (i, j))
        scratch = [pltpu.VMEM((tm, tn), jnp.float32)]
        dims = ("parallel", "parallel", "arbitrary")
    else:
        grid = (grid_n, grid_m)
        x_spec = pl.BlockSpec((tm, k_pad), lambda j, i: (i, 0))
        wv_spec = w_block_spec(lambda j, i: (j, 0))
        wt_spec = w_block_spec(lambda j, i: (j, 0))
        m_spec = pl.BlockSpec((tm, 1), lambda j, i: (i, 0))
        o_spec = pl.BlockSpec((tm, tn), lambda j, i: (i, j))
        scratch = []
        dims = ("parallel", "parallel")

    kernel = _make_kernel(compute_dtype, k_tiled)

    out = pl.pallas_call(
        kernel,
        out_shape=jax.ShapeDtypeStruct((m_pad, n_pad), out_dtype),
        grid_spec=pltpu.PrefetchScalarGridSpec(
            num_scalar_prefetch=0,
            grid=grid,
            in_specs=[x_spec, wv_spec, wt_spec, m_spec],
            out_specs=o_spec,
            scratch_shapes=scratch,
        ),
        compiler_params=pltpu.CompilerParams(
            dimension_semantics=dims,
            vmem_limit_bytes=vmem_limit_bytes,
        ),
    )(x_flat, wv, wt, mask_flat)

    if m_pad != M or n_pad != N:
        out = out[:M, :N]
    return out.reshape(B, S, N)


def _reference(x, w_v, w_t, visual_mask):
    ref_v = jnp.einsum("bsk,nk->bsn", x, w_v)
    ref_t = jnp.einsum("bsk,nk->bsn", x, w_t)
    return jnp.where(visual_mask[..., None], ref_v, ref_t)


if __name__ == "__main__":
    key = jax.random.PRNGKey(0)

    # --- Test 1: shapes matching the module's forward (f32 path). ---
    B, S, IN_DIM, OUT_DIM = 2, 8, 32, 32
    k_x, k_wv, k_wt, k_m, key = jax.random.split(key, 5)
    x = jax.random.normal(k_x, (B, S, IN_DIM), dtype=jnp.float32)
    w_v = jax.random.normal(k_wv, (OUT_DIM, IN_DIM), dtype=jnp.float32) * 0.1
    w_t = jax.random.normal(k_wt, (OUT_DIM, IN_DIM), dtype=jnp.float32) * 0.1
    mask = jax.random.bernoulli(k_m, 0.5, (B, S))

    out = jax.block_until_ready(masked_linear(x, w_v, w_t, mask))
    ref = _reference(x, w_v, w_t, mask)
    assert out.shape == (B, S, OUT_DIM)
    assert jnp.allclose(out, ref, atol=1e-5, rtol=1e-5)

    # --- Test 2: ragged M (row padding) + N not a multiple of 128 (lane
    #     padding) + bf16 in-kernel compute path. ---
    B2, S2, IN2, OUT2 = 3, 5, 48, 96
    k_x, k_wv, k_wt, k_m, key = jax.random.split(key, 5)
    x2 = jax.random.normal(k_x, (B2, S2, IN2), dtype=jnp.float32)
    w_v2 = jax.random.normal(k_wv, (OUT2, IN2), dtype=jnp.float32) * 0.1
    w_t2 = jax.random.normal(k_wt, (OUT2, IN2), dtype=jnp.float32) * 0.1
    mask2 = jax.random.bernoulli(k_m, 0.3, (B2, S2))

    out2 = jax.block_until_ready(masked_linear(x2, w_v2, w_t2, mask2))
    ref2 = _reference(x2, w_v2, w_t2, mask2)
    assert out2.shape == (B2, S2, OUT2)
    assert jnp.allclose(out2, ref2, atol=1e-5, rtol=1e-5)

    out2_bf16 = jax.block_until_ready(
        masked_linear(x2, w_v2, w_t2, mask2, compute_dtype=jnp.bfloat16))
    assert jnp.allclose(out2_bf16, ref2, atol=0.1, rtol=0.1)

    # --- Test 3: forced K tiling (accumulator + pl.when path) and multiple
    #     M tiles, at small scale. ---
    B3, S3, IN3, OUT3 = 2, 24, 256, 128
    k_x, k_wv, k_wt, k_m, key = jax.random.split(key, 5)
    x3 = jax.random.normal(k_x, (B3, S3, IN3), dtype=jnp.float32)
    w_v3 = jax.random.normal(k_wv, (OUT3, IN3), dtype=jnp.float32) * 0.05
    w_t3 = jax.random.normal(k_wt, (OUT3, IN3), dtype=jnp.float32) * 0.05
    mask3 = jax.random.bernoulli(k_m, 0.5, (B3, S3))

    out3 = jax.block_until_ready(
        masked_linear(x3, w_v3, w_t3, mask3, tm=16, tk=128))
    ref3 = _reference(x3, w_v3, w_t3, mask3)
    assert out3.shape == (B3, S3, OUT3)
    assert jnp.allclose(out3, ref3, atol=1e-4, rtol=1e-4)

    # --- Test 4: forced N tiling (outer weight axis), small scale. ---
    B4, S4, IN4, OUT4 = 2, 8, 64, 256
    k_x, k_wv, k_wt, k_m, key = jax.random.split(key, 5)
    x4 = jax.random.normal(k_x, (B4, S4, IN4), dtype=jnp.float32)
    w_v4 = jax.random.normal(k_wv, (OUT4, IN4), dtype=jnp.float32) * 0.05
    w_t4 = jax.random.normal(k_wt, (OUT4, IN4), dtype=jnp.float32) * 0.05
    mask4 = jax.random.bernoulli(k_m, 0.5, (B4, S4))

    out4 = jax.block_until_ready(masked_linear(x4, w_v4, w_t4, mask4, tn=128))
    ref4 = _reference(x4, w_v4, w_t4, mask4)
    assert out4.shape == (B4, S4, OUT4)
    assert jnp.allclose(out4, ref4, atol=1e-4, rtol=1e-4)

    print("KERNEL_OK")
</pallas_src>

<mosaic_0001>
module attributes {stable_mosaic.version = 11 : i64} {
  func.func @kernel(%arg0: i32, %arg1: i32, %arg2: memref<16x32xf32, #tpu.memory_space<vmem>>, %arg3: memref<128x32xf32, #tpu.memory_space<vmem>>, %arg4: memref<128x32xf32, #tpu.memory_space<vmem>>, %arg5: memref<16x1xi32, #tpu.memory_space<vmem>>, %arg6: memref<16x128xf32, #tpu.memory_space<vmem>>) attributes {dimension_semantics = [#tpu.dimension_semantics<parallel>, #tpu.dimension_semantics<parallel>], iteration_bounds = array<i64: 1, 1>, scalar_prefetch = 0 : i64, scratch_operands = 0 : i64, tpu.core_type = #tpu.core_type<tc>, window_params = [{transform_indices = @transform_0, window_bounds = array<i64: 16, 32>}, {transform_indices = @transform_1, window_bounds = array<i64: 128, 32>}, {transform_indices = @transform_2, window_bounds = array<i64: 128, 32>}, {transform_indices = @transform_3, window_bounds = array<i64: 16, 1>}, {transform_indices = @transform_4, window_bounds = array<i64: 16, 128>}]} {
    %c0 = arith.constant 0 : index
    %c0_0 = arith.constant 0 : index
    %0 = vector.load %arg2[%c0, %c0_0] : memref<16x32xf32, #tpu.memory_space<vmem>>, vector<16x32xf32>
    %c0_1 = arith.constant 0 : index
    %c0_2 = arith.constant 0 : index
    %1 = vector.load %arg3[%c0_1, %c0_2] : memref<128x32xf32, #tpu.memory_space<vmem>>, vector<128x32xf32>
    %c0_3 = arith.constant 0 : index
    %c0_4 = arith.constant 0 : index
    %2 = vector.load %arg4[%c0_3, %c0_4] : memref<128x32xf32, #tpu.memory_space<vmem>>, vector<128x32xf32>
    %c0_5 = arith.constant 0 : index
    %c0_6 = arith.constant 0 : index
    %3 = vector.load %arg5[%c0_5, %c0_6] : memref<16x1xi32, #tpu.memory_space<vmem>>, vector<16x1xi32>
    %c0_i32 = arith.constant 0 : i32
    %4 = vector.broadcast %c0_i32 : i32 to vector<16x1xi32>
    %5 = arith.cmpi ne, %3, %4 : vector<16x1xi32>
    %c0_i32_7 = arith.constant 0 : i32
    %6 = arith.sitofp %c0_i32_7 : i32 to f32
    %7 = vector.shape_cast %5 : vector<16x1xi1> to vector<16x1xi1>
    %8 = vector.broadcast %7 : vector<16x1xi1> to vector<16x32xi1>
    %9 = vector.broadcast %6 : f32 to vector<16x32xf32>
    %10 = arith.select %8, %0, %9 : vector<16x32xi1>, vector<16x32xf32>
    %c0_i32_8 = arith.constant 0 : i32
    %11 = arith.sitofp %c0_i32_8 : i32 to f32
    %12 = vector.shape_cast %5 : vector<16x1xi1> to vector<16x1xi1>
    %13 = vector.broadcast %12 : vector<16x1xi1> to vector<16x32xi1>
    %14 = vector.broadcast %11 : f32 to vector<16x32xf32>
    %15 = arith.select %13, %14, %0 : vector<16x32xi1>, vector<16x32xf32>
    %cst = arith.constant dense<0.000000e+00> : vector<16x128xf32>
    %16 = tpu.matmul %15, %2, %cst {dimension_numbers = #tpu.dot_dimension_numbers<[1], [1], [0], [0], [0, 0, 1, 0], [], []>} : vector<16x32xf32>, vector<128x32xf32>, vector<16x128xf32> -> vector<16x128xf32>
    %cst_9 = arith.constant dense<0.000000e+00> : vector<16x128xf32>
    %17 = tpu.matmul %10, %1, %cst_9 {dimension_numbers = #tpu.dot_dimension_numbers<[1], [1], [0], [0], [0, 0, 1, 0], [], []>} : vector<16x32xf32>, vector<128x32xf32>, vector<16x128xf32> -> vector<16x128xf32>
    %18 = arith.addf %16, %17 : vector<16x128xf32>
    %c0_10 = arith.constant 0 : index
    %c0_11 = arith.constant 0 : index
    %19 = vector.load %arg6[%c0_10, %c0_11] : memref<16x128xf32, #tpu.memory_space<vmem>>, vector<16x128xf32>
    tpu.vector_store %arg6[%c0_10, %c0_11], %18 {strides = array<i32>} : memref<16x128xf32, #tpu.memory_space<vmem>>, vector<16x128xf32>,
    return
  }
  func.func @transform_0(%arg0: i32, %arg1: i32) -> (i32, i32) {
    %c0_i32 = arith.constant 0 : i32
    %c0_i32_0 = arith.constant 0 : i32
    return %arg1, %c0_i32 : i32, i32
  }
  func.func @transform_1(%arg0: i32, %arg1: i32) -> (i32, i32) {
    %c0_i32 = arith.constant 0 : i32
    %c0_i32_0 = arith.constant 0 : i32
    return %arg0, %c0_i32 : i32, i32
  }
  func.func @transform_2(%arg0: i32, %arg1: i32) -> (i32, i32) {
    %c0_i32 = arith.constant 0 : i32
    %c0_i32_0 = arith.constant 0 : i32
    return %arg0, %c0_i32 : i32, i32
  }
  func.func @transform_3(%arg0: i32, %arg1: i32) -> (i32, i32) {
    %c0_i32 = arith.constant 0 : i32
    %c0_i32_0 = arith.constant 0 : i32
    return %arg1, %c0_i32 : i32, i32
  }
  func.func @transform_4(%arg0: i32, %arg1: i32) -> (i32, i32) {
    %c0_i32 = arith.constant 0 : i32
    return %arg1, %arg0 : i32, i32
  }
}

</mosaic_0001>

<bundles_post_ra>
// kernel: tpu_custom_call.1
= control target key start
LH: loop header
LB: loop body
LE: loop exit
PB: predicated region body
PF: predicated region fallthrough
CT: control target
= control target key end

     0   :  { %vm70_vm0 = vcmask 261120   ;;  %v516_v3 = vmov 0   ;;  %s724_s0 = inlined_call_operand.vmem [shape: f32[16,32], index: 0, kind: input, shape index: {}]   ;;  %s725_s1 = inlined_call_operand.vmem [shape: f32[128,32], index: 1, kind: input, shape index: {}]   ;;  %s726_s2 = inlined_call_operand.vmem [shape: f32[128,32], index: 2, kind: input, shape index: {}]   ;;  %s727_s3 = inlined_call_operand.vmem [shape: s32[16,1], index: 3, kind: input, shape index: {}]   ;;  %s728_s4 = inlined_call_operand.hbm [shape: f32[16,128], index: 4, kind: output, shape index: {}]  }
   0x1   :  { %v52_v0 = vld [vmem:[%s727_s3] sm:$0xff]  ;;  %v53_v1 = vld [vmem:[%s727_s3 + $0x8] sm:$0xff]  ;;  %v35_v2 = vld [vmem:[%s725_s1 + $0x78] sm:$0xff]  ;;  %493 = vset.pattern.permute.xlu0 %v516_v3 }
   0x2   :  { %vm54_vm1 = vcmp.ne.s32.totalorder %v52_v0, 0  ;;  %vm55_vm2 = vcmp.ne.s32.totalorder %v53_v1, 0  ;;  %419 = vmatprep.subr.msk.mxu0 %vm70_vm0, %v35_v2  ;;  %v51_v4 = vld [vmem:[%s726_s2 + $0x78] sm:$0xff]  ;;  %v34_v5 = vld [vmem:[%s725_s1 + $0x70] sm:$0xff]  ;;  %v33_v9 = vld [vmem:[%s725_s1 + $0x68] sm:$0xff] }
   0x3   :  { %v50_v6 = vld [vmem:[%s726_s2 + $0x70] sm:$0xff]  ;;  %v56_v7 = vsel %vm54_vm1, 1, %v516_v3  ;;  %454 = vmatprep.subr.msk.mxu1 %vm70_vm0, %v51_v4  ;;  %420 = vmatpush3.xpose.msk.msra.mxu0 %vm70_vm0, %v35_v2  ;;  %v57_v8 = vsel %vm55_vm2, 1, %v516_v3  ;;  %v49_v10 = vld [vmem:[%s726_s2 + $0x68] sm:$0xff]  ;;  %v32_v11 = vld [vmem:[%s725_s1 + $0x60] sm:$0xff] }
   0x4   :  { %59 = vperm.xlu0 %493, %v56_v7   ;;  %455 = vmatpush3.xpose.msk.msra.mxu1 %vm70_vm0, %v51_v4  ;;  %v48_v12 = vld [vmem:[%s726_s2 + $0x60] sm:$0xff]  ;;  %v31_v13 = vld [vmem:[%s725_s1 + $0x58] sm:$0xff] }
   0x5   :  { %421 = vmatprep.subr.msk.mxu0 %vm70_vm0, %v34_v5  ;;  %456 = vmatprep.subr.msk.mxu1 %vm70_vm0, %v50_v6 }
   0x7   :  { %422 = vmatpush3.xpose.msk.msra.mxu0 %vm70_vm0, %v34_v5 }
   0x8   :  { %62 = vperm.xlu0 %493, %v57_v8   ;;  %457 = vmatpush3.xpose.msk.msra.mxu1 %vm70_vm0, %v50_v6 }
   0x9   :  { %423 = vmatprep.subr.msk.mxu0 %vm70_vm0, %v33_v9  ;;  %458 = vmatprep.subr.msk.mxu1 %vm70_vm0, %v49_v10 }
   0xb   :  { %424 = vmatpush3.xpose.msk.msra.mxu0 %vm70_vm0, %v33_v9 }
   0xc   :  { %459 = vmatpush3.xpose.msk.msra.mxu1 %vm70_vm0, %v49_v10  ;;  %425 = vmatprep.subr.msk.mxu0 %vm70_vm0, %v32_v11 }
   0xd   :  { %460 = vmatprep.subr.msk.mxu1 %vm70_vm0, %v48_v12 }
   0xe   :  { %9 = vsyncpa [#allocation3], 0  ;;  %v47_v14 = vld [vmem:[%s726_s2 + $0x58] sm:$0xff]  ;;  %v30_v15 = vld [vmem:[%s725_s1 + $0x50] sm:$0xff]  ;;  %s517_s30 = smov [#allocation2]  }
   0xf   :  { %426 = vmatpush3.xpose.msk.msra.mxu0 %vm70_vm0, %v32_v11  ;;  %v46_v16 = vld [vmem:[%s726_s2 + $0x50] sm:$0xff]  ;;  %v29_v17 = vld [vmem:[%s725_s1 + $0x48] sm:$0xff]  ;;  %v28_v19 = vld [vmem:[%s725_s1 + $0x40] sm:$0xff]  ;;  %s336_s5 = sshll.u32 %s517_s30, 4  ;;  %s337_s5 = int_to_ptr.vmem [resolvable:$true] %s336_s5 }
  0x10   :  { %461 = vmatpush3.xpose.msk.msra.mxu1 %vm70_vm0, %v48_v12  ;;  %427 = vmatprep.subr.msk.mxu0 %vm70_vm0, %v31_v13  ;;  %v45_v18 = vld [vmem:[%s726_s2 + $0x48] sm:$0xff]  ;;  %v44_v20 = vld [vmem:[%s726_s2 + $0x40] sm:$0xff]  ;;  %v27_v21 = vld [vmem:[%s725_s1 + $0x38] sm:$0xff]  ;;  %p499_p1 = scmp.lt.s32.totalorder %s337_s5, %s337_s5 }
  0x11   :  { %462 = vmatprep.subr.msk.mxu1 %vm70_vm0, %v47_v14  ;;  %v43_v22 = vld [vmem:[%s726_s2 + $0x38] sm:$0xff]  ;;  %v26_v23 = vld [vmem:[%s725_s1 + $0x30] sm:$0xff]  ;;  %v25_v25 = vld [vmem:[%s725_s1 + $0x28] sm:$0xff] }
  0x12   :  { %v42_v24 = vld [vmem:[%s726_s2 + $0x30] sm:$0xff]  ;;  %v41_v26 = vld [vmem:[%s726_s2 + $0x28] sm:$0xff]  ;;  %v24_v27 = vld [vmem:[%s725_s1 + $0x20] sm:$0xff] }
  0x13   :  { %428 = vmatpush3.xpose.msk.msra.mxu0 %vm70_vm0, %v31_v13  ;;  %v40_v28 = vld [vmem:[%s726_s2 + $0x20] sm:$0xff]  ;;  %v23_v29 = vld [vmem:[%s725_s1 + $0x18] sm:$0xff]  ;;  %v22_v31 = vld [vmem:[%s725_s1 + $0x10] sm:$0xff] }
  0x14   :  { %463 = vmatpush3.xpose.msk.msra.mxu1 %vm70_vm0, %v47_v14  ;;  %429 = vmatprep.subr.msk.mxu0 %vm70_vm0, %v30_v15  ;;  %v39_v30 = vld [vmem:[%s726_s2 + $0x18] sm:$0xff]  ;;  %v38_v32 = vld [vmem:[%s726_s2 + $0x10] sm:$0xff]  ;;  %v21_v33 = vld [vmem:[%s725_s1 + $0x8] sm:$0xff] }
  0x15   :  { %464 = vmatprep.subr.msk.mxu1 %vm70_vm0, %v46_v16  ;;  %v37_v34 = vld [vmem:[%s726_s2 + $0x8] sm:$0xff]  ;;  %v20_v35 = vld [vmem:[%s725_s1] sm:$0xff] }
  0x16   :  { %v36_v36 = vld [vmem:[%s726_s2] sm:$0xff]  ;;  %v19_v41 = vld [vmem:[%s724_s0 + $0x8] sm:$0xff] }
  0x17   :  { %430 = vmatpush3.xpose.msk.msra.mxu0 %vm70_vm0, %v30_v15  ;;  %v18_v37 = vld [vmem:[%s724_s0] sm:$0xff]  ;;  %s494_s0 = scalar_lea.vmem %s337_s5, 256 }
  0x18   :  { %465 = vmatpush3.xpose.msk.msra.mxu1 %vm70_vm0, %v46_v16  ;;  %431 = vmatprep.subr.msk.mxu0 %vm70_vm0, %v29_v17  ;;  %p495_p0 = scmp.ne.s32.totalorder %s337_s5, %s494_s0  ;;  %p500_p2 = scmp.lt.s32.totalorder %s494_s0, %s494_s0 }
  0x19   :  { %466 = vmatprep.subr.msk.mxu1 %vm70_vm0, %v45_v18 }
  0x1a   :  { %p501_p3 = por %p500_p2, %p499_p1 }
  0x1b   :  { %432 = vmatpush3.xpose.msk.msra.mxu0 %vm70_vm0, %v29_v17 }
  0x1c   :  { %467 = vmatpush3.xpose.msk.msra.mxu1 %vm70_vm0, %v45_v18  ;;  %433 = vmatprep.subr.msk.mxu0 %vm70_vm0, %v28_v19  ;;  %p502_p4 = pnand %p501_p3, %p495_p0 }
  0x1d   :  { %468 = vmatprep.subr.msk.mxu1 %vm70_vm0, %v44_v20 }
  0x1f   :  { %434 = vmatpush3.xpose.msk.msra.mxu0 %vm70_vm0, %v28_v19 }
  0x20   :  { %469 = vmatpush3.xpose.msk.msra.mxu1 %vm70_vm0, %v44_v20  ;;  %435 = vmatprep.subr.msk.mxu0 %vm70_vm0, %v27_v21 }
  0x21   :  { %470 = vmatprep.subr.msk.mxu1 %vm70_vm0, %v43_v22 }
  0x23   :  { %436 = vmatpush3.xpose.msk.msra.mxu0 %vm70_vm0, %v27_v21 }
  0x24   :  { %471 = vmatpush3.xpose.msk.msra.mxu1 %vm70_vm0, %v43_v22  ;;  %437 = vmatprep.subr.msk.mxu0 %vm70_vm0, %v26_v23 }
  0x25   :  { %472 = vmatprep.subr.msk.mxu1 %vm70_vm0, %v42_v24 }
  0x27   :  { %438 = vmatpush3.xpose.msk.msra.mxu0 %vm70_vm0, %v26_v23 }
  0x28   :  { %473 = vmatpush3.xpose.msk.msra.mxu1 %vm70_vm0, %v42_v24  ;;  %439 = vmatprep.subr.msk.mxu0 %vm70_vm0, %v25_v25 }
  0x29   :  { %474 = vmatprep.subr.msk.mxu1 %vm70_vm0, %v41_v26 }
  0x2b   :  { %440 = vmatpush3.xpose.msk.msra.mxu0 %vm70_vm0, %v25_v25 }
  0x2c   :  { %475 = vmatpush3.xpose.msk.msra.mxu1 %vm70_vm0, %v41_v26  ;;  %441 = vmatprep.subr.msk.mxu0 %vm70_vm0, %v24_v27 }
  0x2d   :  { %476 = vmatprep.subr.msk.mxu1 %vm70_vm0, %v40_v28 }
  0x2f   :  { %442 = vmatpush3.xpose.msk.msra.mxu0 %vm70_vm0, %v24_v27 }
  0x30   :  { %477 = vmatpush3.xpose.msk.msra.mxu1 %vm70_vm0, %v40_v28  ;;  %443 = vmatprep.subr.msk.mxu0 %vm70_vm0, %v23_v29 }
  0x31   :  { %478 = vmatprep.subr.msk.mxu1 %vm70_vm0, %v39_v30 }
  0x33   :  { %444 = vmatpush3.xpose.msk.msra.mxu0 %vm70_vm0, %v23_v29 }
  0x34   :  { %479 = vmatpush3.xpose.msk.msra.mxu1 %vm70_vm0, %v39_v30  ;;  %445 = vmatprep.subr.msk.mxu0 %vm70_vm0, %v22_v31 }
  0x35   :  { %480 = vmatprep.subr.msk.mxu1 %vm70_vm0, %v38_v32 }
  0x37   :  { %446 = vmatpush3.xpose.msk.msra.mxu0 %vm70_vm0, %v22_v31 }
  0x38   :  { %481 = vmatpush3.xpose.msk.msra.mxu1 %vm70_vm0, %v38_v32  ;;  %447 = vmatprep.subr.msk.mxu0 %vm70_vm0, %v21_v33 }
  0x39   :  { %482 = vmatprep.subr.msk.mxu1 %vm70_vm0, %v37_v34 }
  0x3b   :  { %448 = vmatpush3.xpose.msk.msra.mxu0 %vm70_vm0, %v21_v33 }
  0x3c   :  { %483 = vmatpush3.xpose.msk.msra.mxu1 %vm70_vm0, %v37_v34  ;;  %449 = vmatprep.subr.msk.mxu0 %vm70_vm0, %v20_v35 }
  0x3d   :  { %484 = vmatprep.subr.msk.mxu1 %vm70_vm0, %v36_v36 }
  0x3f   :  { %450 = vmatpush3.xpose.msk.msra.mxu0 %vm70_vm0, %v20_v35 }
  0x40   :  { %485 = vmatpush3.xpose.msk.msra.mxu1 %vm70_vm0, %v36_v36 }
  0x7f   :  { %v60_v38 = vpop.permute.xlu0 %59 }
  0x80   :  { %vm64_vm3 = vcmp.eq.s32.totalorder %v60_v38, 1 }
  0x81   :  { %v66_v39 = vsel %vm64_vm3, %v18_v37, 0.0  ;;  %v68_v40 = vsel %vm64_vm3, 0.0, %v18_v37 }
  0x82   :  { %451 = vmatprep.mubr.msk.f32.mxu0 %vm70_vm0, %v66_v39  ;;  %486 = vmatprep.mubr.msk.f32.mxu1 %vm70_vm0, %v68_v40 }
  0x83   :  { %v63_v42 = vpop.permute.xlu0 %62 }
  0x84   :  { %vm65_vm4 = vcmp.eq.s32.totalorder %v63_v42, 1 }
  0x85   :  { %v67_v43 = vsel %vm65_vm4, %v19_v41, 0.0  ;;  %v69_v44 = vsel %vm65_vm4, 0.0, %v19_v41 }
  0x86   :  { %452 = vmatmul.mubr.msk.f32.vlgmr.msra.gmra.mxu0 %vm70_vm0, %v67_v43  ;;  %487 = vmatmul.mubr.msk.f32.vlgmr.msra.gmra.mxu1 %vm70_vm0, %v69_v44 }
 0x146   :  { %v453_v45 = vpop.f32.mrf.mxu0  ;;  %v488_v46 = vpop.f32.mrf.mxu1 }
 0x147   :  { %v326_v47 = vadd.f32 %v488_v46, %v453_v45 }
 0x148   :  { %v191_v48 = vpop.f32.mrf.mxu0  ;;  %v320_v49 = vpop.f32.mrf.mxu1 }
 0x149   :  { %330 = vst [vmem:[#allocation2 + $0x8] sm:$0xff] %v326_v47  ;;  %v321_v50 = vadd.f32 %v320_v49, %v191_v48 }
 0x14b   :  { %329 = vst [vmem:[#allocation2] sm:$0xff] %v321_v50 }
 0x14c   :  { %505 = shalt.err (!%p502_p4)
}
 0x14d   :  { %s518_s6 = smov 128   ;;  %s519_s7 = smov 8  }
 0x14e   :  { %342 = dma.vmem_to_hbm [thread:$0]  %s337_s5, 256, %s728_s4, [#allocation3], %s518_s6, %s518_s6, %s519_s7  }
 0x14f   :  { %514 = dma.done.wait [#allocation3], 256  }
 0x150   :  { %515 = vsyncadd [#allocation3], 4294967040 }
 0x151   :  { %346 = vsyncpa [#allocation3], 1 }

</bundles_post_ra>
